<compile_context>
chip_gen: v5e
topology: v5e:2x2
jax: 0.10.0
libtpu: 0.0.40
codegen_flags: <defaults>
</compile_context>

<pallas_src>
import jax
import jax.numpy as jnp
from jax.experimental import pallas as pl
from jax.experimental.pallas import tpu as pltpu

# CartPole-like env sizes (matches the PyTorch spec's env): 4 state dims, 2 actions.
NUM_STATES = 4
NUM_ACTIONS = 2
HIDDEN = 128
ACTION_PAD = 8            # pad action dim to 8 lanes (narrow output -> 16x less writeback)
NEG_INF = -1e30           # bias for padded action columns -> exp() == 0 under softmax
MAX_TB = 1024             # batch-tile upper bound (amortizes ~0.35us/step grid overhead)


def _cdiv(a, b):
    return (a + b - 1) // b


def _round_up(x, m):
    return _cdiv(x, m) * m


def policy_kernel(x_ref, w1_ref, b1_ref, w2p_ref, b2p_ref, out_ref):
    # fc1: K=4 contraction -> 4 unrolled broadcast multiply-adds on the VPU
    # (an MXU matmul with K=4 would use <3% of the systolic array).
    x = x_ref[...]                          # (TB, NUM_STATES)
    w1 = w1_ref[...]                        # (NUM_STATES, HIDDEN)
    h = x[:, 0:1] * w1[0:1, :]
    for k in range(1, NUM_STATES):
        h = h + x[:, k:k + 1] * w1[k:k + 1, :]
    h = jnp.maximum(h + b1_ref[...], 0.0)   # (TB, HIDDEN), bias broadcast

    # fc2 on the MXU: (TB,128) @ (128,8).  N=8 under-fills the MXU but the matmul is
    # trivially small; what matters is that only 8 lanes are softmaxed and stored.
    logits = jnp.dot(h, w2p_ref[...], preferred_element_type=jnp.float32) + b2p_ref[...]

    # Numerically-stable softmax over the (8-lane padded) action axis (PyTorch dim=1).
    # Padded columns carry a -1e30 bias so exp() underflows to exactly 0 and the
    # 8-lane softmax equals the 2-action softmax on the real columns.
    m = jnp.max(logits, axis=-1, keepdims=True)
    e = jnp.exp(logits - m)
    denom = jnp.sum(e, axis=-1, keepdims=True)
    out_ref[...] = e / denom                # exact divide: rows sum to 1 at f32 precision


def prepare_params(w1, b1, w2, b2):
    """One-time fc2 padding to the 8-lane action layout (hoisted out of the per-call
    path): zero weight columns + -1e30 bias on the padded logits."""
    w2p = jnp.zeros((HIDDEN, ACTION_PAD), jnp.float32).at[:, :NUM_ACTIONS].set(w2)
    b2p = jnp.full((1, ACTION_PAD), NEG_INF, jnp.float32).at[:, :NUM_ACTIONS].set(b2)
    return w1, b1, w2p, b2p


@jax.jit
def softmax_policy_forward(state, w1, b1, w2p, b2p):
    """state: (B, NUM_STATES) f32 -> (B, NUM_ACTIONS) action probabilities."""
    B = state.shape[0]
    B8 = _round_up(B, 8)

    # Tiling: pick the tile count first, then split the batch evenly (multiple of 8).
    # Force >= 2 tiles whenever the batch can be split so v7x's two TensorCores both
    # get work on the "parallel" axis; one extra grid step is noise on 1-TC v5e/v6e.
    n_tiles = max(1, _cdiv(B8, MAX_TB))
    if B8 >= 16:
        n_tiles = max(n_tiles, 2)
    tb = _round_up(_cdiv(B8, n_tiles), 8)
    b_pad = n_tiles * tb
    if b_pad != B:
        state = jnp.pad(state, ((0, b_pad - B), (0, 0)))

    # Constant (block-index (0,0)) weight/bias specs stay VMEM-resident across grid
    # steps: unchanged block index -> the pipeline does not re-DMA them.
    const = lambda shape: pl.BlockSpec(shape, lambda i: (0, 0))
    out = pl.pallas_call(
        policy_kernel,
        out_shape=jax.ShapeDtypeStruct((b_pad, ACTION_PAD), jnp.float32),
        grid=(n_tiles,),
        in_specs=[
            pl.BlockSpec((tb, NUM_STATES), lambda i: (i, 0)),   # state: tiled over batch
            const((NUM_STATES, HIDDEN)),                        # w1
            const((1, HIDDEN)),                                 # b1
            const((HIDDEN, ACTION_PAD)),                        # w2 (padded)
            const((1, ACTION_PAD)),                             # b2 (padded)
        ],
        out_specs=pl.BlockSpec((tb, ACTION_PAD), lambda i: (i, 0)),
        compiler_params=pltpu.CompilerParams(
            dimension_semantics=("parallel",)),                 # v7x: shard batch over TCs
    )(state, w1, b1, w2p, b2p)

    return out[:B, :NUM_ACTIONS]


def init_params(key):
    # Mirrors nn.Linear default init: U(-1/sqrt(fan_in), 1/sqrt(fan_in)).
    k1, k2, k3, k4 = jax.random.split(key, 4)
    bound1 = 1.0 / jnp.sqrt(jnp.float32(NUM_STATES))
    bound2 = 1.0 / jnp.sqrt(jnp.float32(HIDDEN))
    w1 = jax.random.uniform(k1, (NUM_STATES, HIDDEN), jnp.float32, -bound1, bound1)
    b1 = jax.random.uniform(k2, (1, HIDDEN), jnp.float32, -bound1, bound1)
    w2 = jax.random.uniform(k3, (HIDDEN, NUM_ACTIONS), jnp.float32, -bound2, bound2)
    b2 = jax.random.uniform(k4, (1, NUM_ACTIONS), jnp.float32, -bound2, bound2)
    return w1, b1, w2, b2


def _reference(state, w1, b1, w2, b2):
    h = jnp.maximum(state @ w1 + b1, 0.0)
    return jax.nn.softmax(h @ w2 + b2, axis=1)


if __name__ == "__main__":
    key = jax.random.PRNGKey(0)
    pkey, xkey, xkey2 = jax.random.split(key, 3)
    w1, b1, w2, b2 = init_params(pkey)
    pw1, pb1, pw2p, pb2p = prepare_params(w1, b1, w2, b2)   # one-time padding

    # Small demo batch (grid = 1 tile).
    B = 8
    state = jax.random.normal(xkey, (B, NUM_STATES), jnp.float32)
    policy = jax.block_until_ready(softmax_policy_forward(state, pw1, pb1, pw2p, pb2p))
    ref = _reference(state, w1, b1, w2, b2)
    assert policy.shape == (B, NUM_ACTIONS)
    assert jnp.allclose(policy, ref, atol=2e-3, rtol=2e-3)
    assert jnp.allclose(jnp.sum(policy, axis=1), 1.0, atol=2e-3)

    # Larger batch to exercise the tiled grid (2 tiles of 256, both TCs busy on v7x).
    B2 = 512
    state2 = jax.random.normal(xkey2, (B2, NUM_STATES), jnp.float32)
    policy2 = jax.block_until_ready(softmax_policy_forward(state2, pw1, pb1, pw2p, pb2p))
    ref2 = _reference(state2, w1, b1, w2, b2)
    assert policy2.shape == (B2, NUM_ACTIONS)
    assert jnp.allclose(policy2, ref2, atol=2e-3, rtol=2e-3)
    assert jnp.allclose(jnp.sum(policy2, axis=1), 1.0, atol=2e-3)

    print("KERNEL_OK")
</pallas_src>

<mosaic_0001>
module attributes {stable_mosaic.version = 11 : i64} {
  func.func @policy_kernel(%arg0: i32, %arg1: memref<8x4xf32, #tpu.memory_space<vmem>>, %arg2: memref<4x128xf32, #tpu.memory_space<vmem>>, %arg3: memref<1x128xf32, #tpu.memory_space<vmem>>, %arg4: memref<128x8xf32, #tpu.memory_space<vmem>>, %arg5: memref<1x8xf32, #tpu.memory_space<vmem>>, %arg6: memref<8x8xf32, #tpu.memory_space<vmem>>) attributes {dimension_semantics = [#tpu.dimension_semantics<parallel>], iteration_bounds = array<i64: 1>, scalar_prefetch = 0 : i64, scratch_operands = 0 : i64, tpu.core_type = #tpu.core_type<tc>, window_params = [{transform_indices = @transform_0, window_bounds = array<i64: 8, 4>}, {pipeline_mode = #tpu.pipeline_mode<synchronous>, transform_indices = @transform_1, window_bounds = array<i64: 4, 128>}, {pipeline_mode = #tpu.pipeline_mode<synchronous>, transform_indices = @transform_2, window_bounds = array<i64: 1, 128>}, {pipeline_mode = #tpu.pipeline_mode<synchronous>, transform_indices = @transform_3, window_bounds = array<i64: 128, 8>}, {pipeline_mode = #tpu.pipeline_mode<synchronous>, transform_indices = @transform_4, window_bounds = array<i64: 1, 8>}, {transform_indices = @transform_5, window_bounds = array<i64: 8, 8>}]} {
    %c0 = arith.constant 0 : index
    %c0_0 = arith.constant 0 : index
    %0 = vector.load %arg1[%c0, %c0_0] : memref<8x4xf32, #tpu.memory_space<vmem>>, vector<8x4xf32>
    %c0_1 = arith.constant 0 : index
    %c0_2 = arith.constant 0 : index
    %1 = vector.load %arg2[%c0_1, %c0_2] : memref<4x128xf32, #tpu.memory_space<vmem>>, vector<4x128xf32>
    %2 = vector.extract_strided_slice %0 {offsets = [0, 0], sizes = [8, 1], strides = [1, 1]} : vector<8x4xf32> to vector<8x1xf32>
    %3 = vector.extract_strided_slice %1 {offsets = [0, 0], sizes = [1, 128], strides = [1, 1]} : vector<4x128xf32> to vector<1x128xf32>
    %4 = vector.broadcast %2 : vector<8x1xf32> to vector<8x128xf32>
    %5 = vector.broadcast %3 : vector<1x128xf32> to vector<8x128xf32>
    %6 = arith.mulf %4, %5 : vector<8x128xf32>
    %7 = vector.extract_strided_slice %0 {offsets = [0, 1], sizes = [8, 1], strides = [1, 1]} : vector<8x4xf32> to vector<8x1xf32>
    %8 = vector.extract_strided_slice %1 {offsets = [1, 0], sizes = [1, 128], strides = [1, 1]} : vector<4x128xf32> to vector<1x128xf32>
    %9 = vector.broadcast %7 : vector<8x1xf32> to vector<8x128xf32>
    %10 = vector.broadcast %8 : vector<1x128xf32> to vector<8x128xf32>
    %11 = arith.mulf %9, %10 : vector<8x128xf32>
    %12 = arith.addf %6, %11 : vector<8x128xf32>
    %13 = vector.extract_strided_slice %0 {offsets = [0, 2], sizes = [8, 1], strides = [1, 1]} : vector<8x4xf32> to vector<8x1xf32>
    %14 = vector.extract_strided_slice %1 {offsets = [2, 0], sizes = [1, 128], strides = [1, 1]} : vector<4x128xf32> to vector<1x128xf32>
    %15 = vector.broadcast %13 : vector<8x1xf32> to vector<8x128xf32>
    %16 = vector.broadcast %14 : vector<1x128xf32> to vector<8x128xf32>
    %17 = arith.mulf %15, %16 : vector<8x128xf32>
    %18 = arith.addf %12, %17 : vector<8x128xf32>
    %19 = vector.extract_strided_slice %0 {offsets = [0, 3], sizes = [8, 1], strides = [1, 1]} : vector<8x4xf32> to vector<8x1xf32>
    %20 = vector.extract_strided_slice %1 {offsets = [3, 0], sizes = [1, 128], strides = [1, 1]} : vector<4x128xf32> to vector<1x128xf32>
    %21 = vector.broadcast %19 : vector<8x1xf32> to vector<8x128xf32>
    %22 = vector.broadcast %20 : vector<1x128xf32> to vector<8x128xf32>
    %23 = arith.mulf %21, %22 : vector<8x128xf32>
    %24 = arith.addf %18, %23 : vector<8x128xf32>
    %c0_3 = arith.constant 0 : index
    %c0_4 = arith.constant 0 : index
    %25 = vector.load %arg3[%c0_3, %c0_4] : memref<1x128xf32, #tpu.memory_space<vmem>>, vector<1x128xf32>
    %26 = vector.broadcast %25 : vector<1x128xf32> to vector<8x128xf32>
    %27 = arith.addf %24, %26 : vector<8x128xf32>
    %cst = arith.constant 0.000000e+00 : f32
    %28 = vector.broadcast %cst : f32 to vector<8x128xf32>
    %29 = arith.maximumf %27, %28 : vector<8x128xf32>
    %c0_5 = arith.constant 0 : index
    %c0_6 = arith.constant 0 : index
    %30 = vector.load %arg4[%c0_5, %c0_6] : memref<128x8xf32, #tpu.memory_space<vmem>>, vector<128x8xf32>
    %cst_7 = arith.constant dense<0.000000e+00> : vector<8x8xf32>
    %31 = tpu.matmul %29, %30, %cst_7 {dimension_numbers = #tpu.dot_dimension_numbers<[1], [0], [0], [1], [0, 0, 1, 1], [], []>} : vector<8x128xf32>, vector<128x8xf32>, vector<8x8xf32> -> vector<8x8xf32>
    %c0_8 = arith.constant 0 : index
    %c0_9 = arith.constant 0 : index
    %32 = vector.load %arg5[%c0_8, %c0_9] : memref<1x8xf32, #tpu.memory_space<vmem>>, vector<1x8xf32>
    %33 = vector.broadcast %32 : vector<1x8xf32> to vector<8x8xf32>
    %34 = arith.addf %31, %33 : vector<8x8xf32>
    %cst_10 = arith.constant dense<0xFF800000> : vector<8xf32>
    %35 = vector.multi_reduction <maximumf>, %34, %cst_10 [1] : vector<8x8xf32> to vector<8xf32>
    %36 = vector.shape_cast %35 : vector<8xf32> to vector<8x1xf32>
    %37 = vector.broadcast %36 : vector<8x1xf32> to vector<8x8xf32>
    %38 = arith.subf %34, %37 : vector<8x8xf32>
    %39 = math.exp %38 : vector<8x8xf32>
    %cst_11 = arith.constant dense<0.000000e+00> : vector<8xf32>
    %40 = vector.multi_reduction <add>, %39, %cst_11 [1] : vector<8x8xf32> to vector<8xf32>
    %41 = vector.shape_cast %40 : vector<8xf32> to vector<8x1xf32>
    %42 = vector.broadcast %41 : vector<8x1xf32> to vector<8x8xf32>
    %43 = arith.divf %39, %42 : vector<8x8xf32>
    %c0_12 = arith.constant 0 : index
    %c0_13 = arith.constant 0 : index
    %44 = vector.load %arg6[%c0_12, %c0_13] : memref<8x8xf32, #tpu.memory_space<vmem>>, vector<8x8xf32>
    tpu.vector_store %arg6[%c0_12, %c0_13], %43 {strides = array<i32>} : memref<8x8xf32, #tpu.memory_space<vmem>>, vector<8x8xf32>,
    return
  }
  func.func @transform_0(%arg0: i32) -> (i32, i32) {
    %c0_i32 = arith.constant 0 : i32
    %c0_i32_0 = arith.constant 0 : i32
    return %arg0, %c0_i32 : i32, i32
  }
  func.func @transform_1(%arg0: i32) -> (i32, i32) {
    %c0_i32 = arith.constant 0 : i32
    %c0_i32_0 = arith.constant 0 : i32
    %c0_i32_1 = arith.constant 0 : i32
    return %c0_i32, %c0_i32_0 : i32, i32
  }
  func.func @transform_2(%arg0: i32) -> (i32, i32) {
    %c0_i32 = arith.constant 0 : i32
    %c0_i32_0 = arith.constant 0 : i32
    %c0_i32_1 = arith.constant 0 : i32
    return %c0_i32, %c0_i32_0 : i32, i32
  }
  func.func @transform_3(%arg0: i32) -> (i32, i32) {
    %c0_i32 = arith.constant 0 : i32
    %c0_i32_0 = arith.constant 0 : i32
    %c0_i32_1 = arith.constant 0 : i32
    return %c0_i32, %c0_i32_0 : i32, i32
  }
  func.func @transform_4(%arg0: i32) -> (i32, i32) {
    %c0_i32 = arith.constant 0 : i32
    %c0_i32_0 = arith.constant 0 : i32
    %c0_i32_1 = arith.constant 0 : i32
    return %c0_i32, %c0_i32_0 : i32, i32
  }
  func.func @transform_5(%arg0: i32) -> (i32, i32) {
    %c0_i32 = arith.constant 0 : i32
    %c0_i32_0 = arith.constant 0 : i32
    return %arg0, %c0_i32 : i32, i32
  }
}

</mosaic_0001>

<bundles_post_ra>
// kernel: softmax_policy_forward.1
= control target key start
LH: loop header
LB: loop body
LE: loop exit
PB: predicated region body
PF: predicated region fallthrough
CT: control target
= control target key end

     0   :  { %v141_v0 = vmov 0   ;;  %v142_v2 = vmov 2   ;;  %v143_v8 = vmov 1   ;;  %v144_v9 = vmov 3   ;;  %s241_s0 = inlined_call_operand.vmem [shape: f32[8,4], index: 0, kind: input, shape index: {}]   ;;  %s242_s3 = inlined_call_operand.vmem [shape: f32[128,8], index: 3, kind: input, shape index: {}]   ;;  %s243_s2 = inlined_call_operand.vmem [shape: f32[1,128], index: 2, kind: input, shape index: {}]   ;;  %s244_s4 = inlined_call_operand.vmem [shape: f32[1,8], index: 4, kind: input, shape index: {}]   ;;  %s245_s1 = inlined_call_operand.vmem [shape: f32[4,128], index: 1, kind: input, shape index: {}]   ;;  %s246_s5 = inlined_call_operand.vmem [shape: f32[8,8], index: 5, kind: output, shape index: {}]  }
   0x1   :  { %130 = vset.pattern.permute.xlu0 %v141_v0  ;;  %v20_v1 = vld [vmem:[%s241_s0] sm:$0xff]  ;;  %132 = vset.pattern.permute.xlu1 %v142_v2  ;;  %v71_v3 = vld [vmem:[%s242_s3 + $0x78] sm:$0xff]  ;;  %v70_v4 = vld [vmem:[%s242_s3 + $0x70] sm:$0xff]  ;;  %vm96_vm0 = vcmask 64512  }
   0x2   :  { %24 = vperm.xlu0 %130, %v20_v1   ;;  %37 = vperm.xlu1 %132, %v20_v1   ;;  %v69_v5 = vld [vmem:[%s242_s3 + $0x68] sm:$0xff]  ;;  %v68_v6 = vld [vmem:[%s242_s3 + $0x60] sm:$0xff]  ;;  %v67_v7 = vld [vmem:[%s242_s3 + $0x58] sm:$0xff] }
   0x3   :  { %76 = vmatpush.msra.mxu0 %v71_v3  ;;  %v66_v10 = vld [vmem:[%s242_s3 + $0x50] sm:$0xff]  ;;  %v65_v11 = vld [vmem:[%s242_s3 + $0x48] sm:$0xff]  ;;  %v64_v12 = vld [vmem:[%s242_s3 + $0x40] sm:$0xff] }
   0x4   :  { %v63_v13 = vld [vmem:[%s242_s3 + $0x38] sm:$0xff]  ;;  %v62_v14 = vld [vmem:[%s242_s3 + $0x30] sm:$0xff]  ;;  %v61_v15 = vld [vmem:[%s242_s3 + $0x28] sm:$0xff] }
   0x5   :  { %77 = vmatpush.msra.mxu0 %v70_v4  ;;  %v60_v16 = vld [vmem:[%s242_s3 + $0x20] sm:$0xff]  ;;  %v59_v17 = vld [vmem:[%s242_s3 + $0x18] sm:$0xff]  ;;  %v58_v18 = vld [vmem:[%s242_s3 + $0x10] sm:$0xff] }
   0x6   :  { %v57_v19 = vld [vmem:[%s242_s3 + $0x8] sm:$0xff]  ;;  %v56_v20 = vld [vmem:[%s242_s3] sm:$0xff] }
   0x7   :  { %78 = vmatpush.msra.mxu0 %v69_v5  ;;  %v21_v23 = vld [vmem:[%s245_s1] sm:$0xf] }
   0x8   :  { %v27_v24 = vperm.slane %v21_v23, 0  ;;  %v33_v25 = vperm.slane %v21_v23, 1  ;;  %v40_v26 = vperm.slane %v21_v23, 2  ;;  %v47_v27 = vperm.slane %v21_v23, 3  ;;  %v135_v36 = vld [vmem:[%s243_s2] ss:$0 sm:$0xff] }
   0x9   :  { %79 = vmatpush.msra.mxu0 %v68_v6  ;;  %v136_v40 = vld [vmem:[%s244_s4] ss:$0 sm:$0xff] }
   0xa   :  { %131 = vset.pattern.permute.xlu0 %v143_v8  ;;  %133 = vset.pattern.permute.xlu1 %v144_v9 }
   0xb   :  { %30 = vperm.xlu0 %131, %v20_v1   ;;  %44 = vperm.xlu1 %133, %v20_v1  }
   0xc   :  { %80 = vmatpush.msra.mxu0 %v67_v7 }
   0xe   :  { %81 = vmatpush.msra.mxu0 %v66_v10 }
  0x10   :  { %82 = vmatpush.msra.mxu0 %v65_v11 }
  0x12   :  { %83 = vmatpush.msra.mxu0 %v64_v12 }
  0x13   :  { %134 = vset.pattern.permute.xlu0 %v144_v9 }
  0x14   :  { %84 = vmatpush.msra.mxu0 %v63_v13 }
  0x16   :  { %85 = vmatpush.msra.mxu0 %v62_v14 }
  0x18   :  { %86 = vmatpush.msra.mxu0 %v61_v15 }
  0x1a   :  { %87 = vmatpush.msra.mxu0 %v60_v16 }
  0x1c   :  { %88 = vmatpush.msra.mxu0 %v59_v17 }
  0x1e   :  { %89 = vmatpush.msra.mxu0 %v58_v18 }
  0x20   :  { %90 = vmatpush.msra.mxu0 %v57_v19 }
  0x22   :  { %91 = vmatpush.msra.mxu0 %v56_v20 }
  0x74   :  { %v25_v21 = vpop.permute.xlu0 %24  ;;  %v38_v22 = vpop.permute.xlu1 %37 }
  0x75   :  { %v28_v30 = vmul.f32 %v27_v24, %v25_v21  ;;  %v41_v32 = vmul.f32 %v40_v26, %v38_v22 }
  0x7d   :  { %v31_v28 = vpop.permute.xlu0 %30  ;;  %v45_v29 = vpop.permute.xlu1 %44 }
  0x7e   :  { %v34_v31 = vmul.f32 %v33_v25, %v31_v28  ;;  %v48_v34 = vmul.f32 %v47_v27, %v45_v29 }
  0x80   :  { %v35_v33 = vadd.f32 %v34_v31, %v28_v30 }
  0x82   :  { %v42_v35 = vadd.f32 %v41_v32, %v35_v33 }
  0x84   :  { %v49_v37 = vadd.f32 %v48_v34, %v42_v35 }
  0x86   :  { %v54_v38 = vadd.f32 %v135_v36, %v49_v37 }
  0x88   :  { %v55_v39 = vmax.f32 %v54_v38, 0.0 }
  0x8a   :  { %92 = vmatmul.f32.vlgmr.msra.gmra.mxu0 %v55_v39 }
 0x107   :  { %v93_v41 = vpop.f32.mrf.mxu0 }
 0x108   :  { %v94_v42 = vadd.f32 %v136_v40, %v93_v41 }
 0x10a   :  { %v97_v43 = vsel %vm96_vm0, %v94_v42, -inf }
 0x10b   :  { %98 = vmax.xlane.f32.xlu2 %v97_v43 }
 0x17e   :  { %v99_v44 = vpop.xlane.xlu2 %98 }
 0x17f   :  { %v100_v45 = vsub.f32 %v94_v42, %v99_v44 }
 0x181   :  { %v101_v46 = vmul.f32 1.442695, %v100_v45 }
 0x183   :  { %137 = vpow2.f32 %v101_v46 }
 0x189   :  { %v138_v47 = vpop.eup %137 }
 0x18a   :  { %v103_v48 = vsel %vm96_vm0, %v138_v47, 0.0 }
 0x18b   :  { %104 = vadd.xlane.f32.xlu2 %v103_v48 }
 0x1fe   :  { %v105_v49 = vpop.xlane.xlu2 %104 }
 0x1ff   :  { %139 = vrcp.f32 %v105_v49  ;;  %v117_v53 = vand.u32 2147483648, %v105_v49  ;;  %v115_v55 = vand.u32 2147483647, %v105_v49  ;;  %vm111_vm2 = vweird.f32 %v105_v49 }
 0x201   :  { %v118_v57 = vor.u32 1.1754944e-38, %v117_v53  ;;  %vm116_vm4 = vcmp.eq.f32.partialorder %v115_v55, 8.507059e+37 }
 0x205   :  { %v140_v50 = vpop.eup %139 }
 0x206   :  { %v107_v51 = vmul.f32 %v140_v50, %v105_v49  ;;  %vm112_vm1 = vweird.f32 %v140_v50 }
 0x207   :  { %vm113_vm3 = vmor %vm111_vm2, %vm112_vm1 }
 0x208   :  { %v108_v52 = vsub.f32 1.0, %v107_v51 }
 0x20a   :  { %v109_v54 = vmul.f32 %v140_v50, %v108_v52 }
 0x20c   :  { %v110_v56 = vadd.f32 %v140_v50, %v109_v54 }
 0x20e   :  { %v114_v58 = vsel %vm113_vm3, %v140_v50, %v110_v56 }
 0x20f   :  { %v119_v59 = vsel %vm116_vm4, %v118_v57, %v114_v58 }
 0x210   :  { %v120_v60 = vmul.f32 %v138_v47, %v119_v59 }
 0x212   :  { %121 = vst.msk [vmem:[%s246_s5] sm:$0xff] %vm96_vm0, %v120_v60 }

</bundles_post_ra>
